<compile_context>
chip_gen: v5e
topology: v5e:2x2
jax: 0.10.0
libtpu: 0.0.40
codegen_flags: <defaults>
</compile_context>

<pallas_src>
import functools

import jax
import jax.numpy as jnp
from jax import lax
from jax.experimental import pallas as pl
from jax.experimental.pallas import tpu as pltpu

GAMMA = 2.0
ALPHA = 0.25
LANES = 128
SUBLANES = 8


def _round_up(x, m):
    return ((x + m - 1) // m) * m


def _min_sublanes(dtype):
    # f32 -> (8,128), bf16/f16 -> (16,128), int8/fp8 -> (32,128)
    return {4: SUBLANES, 2: 2 * SUBLANES, 1: 4 * SUBLANES}.get(
        jnp.dtype(dtype).itemsize, SUBLANES)


def _tensorcores_per_chip():
    """2 on v7x-class chips (two TCs per chip); 1 on v5e / v6e."""
    try:
        kind = jax.devices()[0].device_kind.lower()
    except Exception:
        return 1
    return 2 if ("v7" in kind or "7x" in kind) else 1


def _focal_elementwise(x, t, gamma, alpha):
    """Stable logit-space focal loss (plain JAX; used for the tiny ragged tail)."""
    e = jnp.exp(-jnp.abs(x))
    log1pe = jnp.log(1.0 + e)
    log_pt = jnp.minimum(x, 0.0) - log1pe
    log_one_m_pt = jnp.minimum(-x, 0.0) - log1pe
    inv = 1.0 / (1.0 + e)
    pt = jnp.where(x >= 0, inv, e * inv)
    one_m_pt = 1.0 - pt
    if gamma == 2:
        w_pos = one_m_pt * one_m_pt
        w_neg = pt * pt
    else:
        w_pos = one_m_pt ** gamma
        w_neg = pt ** gamma
    return ((-alpha) * w_pos * t * log_pt
            - (1.0 - alpha) * w_neg * (1.0 - t) * log_one_m_pt)


def _focal_sum_kernel(p_ref, t_ref, out_ref, acc_ref, *, gamma, alpha, rows,
                      tile_rows, npc, n_tiles, mask_rows, skip_duplicate,
                      approx_recip):
    c = pl.program_id(0)          # per-core partial-sum axis ("parallel")
    i = pl.program_id(1)          # tile / reduction axis ("arbitrary")

    @pl.when(i == 0)
    def _():
        acc_ref[...] = jnp.zeros_like(acc_ref)

    tile_idx = c * npc + i

    def accumulate():
        x = p_ref[...].astype(jnp.float32)
        t = t_ref[...].astype(jnp.float32)

        if mask_rows:
            # Row-level validity: interior tiles have rows_left >= tile_rows so
            # every row passes; only the boundary/partial block is clipped.
            rows_left = rows - tile_idx * tile_rows
            row_ids = lax.broadcasted_iota(jnp.int32, x.shape, 0)
            valid = row_ids < rows_left
            # Clamp BEFORE transcendentals so edge-block garbage never NaNs.
            x = jnp.where(valid, x, 0.0)
            t = jnp.where(valid, t, 0.0)

        # Stable logit-space formulation sharing one exp:
        #   log(sigmoid(x))     = min(x, 0)  - log(1 + exp(-|x|))
        #   log(1 - sigmoid(x)) = min(-x, 0) - log(1 + exp(-|x|))
        #   sigmoid(x)          = 1/(1+e) if x >= 0 else e/(1+e),  e = exp(-|x|)
        e = jnp.exp(-jnp.abs(x))
        log1pe = jnp.log(1.0 + e)
        log_pt = jnp.minimum(x, 0.0) - log1pe
        log_one_m_pt = jnp.minimum(-x, 0.0) - log1pe
        if approx_recip:
            inv = pl.reciprocal(1.0 + e, approx=True)   # EUP slot, frees VALU
        else:
            inv = 1.0 / (1.0 + e)
        pt = jnp.where(x >= 0, inv, e * inv)
        one_m_pt = 1.0 - pt

        if gamma == 2:                   # common case: square on the VPU
            w_pos = one_m_pt * one_m_pt
            w_neg = pt * pt
        else:                            # generic fallback
            w_pos = one_m_pt ** gamma
            w_neg = pt ** gamma

        loss = ((-alpha) * w_pos * t * log_pt
                - (1.0 - alpha) * w_neg * (1.0 - t) * log_one_m_pt)

        if mask_rows:
            loss = jnp.where(valid, loss, 0.0)

        # Per-step sublane-axis reduction (VPU adds + one small sublane fold)
        # into one lane-row of the accumulator.  No reshape -> nothing that
        # could materialize a VMEM copy.  Cross-lane collapse is deferred to
        # the wrapper over the tiny (cores*8, 128) partials.
        acc_ref[pl.ds(0, 1), :] += loss.sum(axis=0, keepdims=True)

    if skip_duplicate:
        # Clamped duplicate tiles (odd tile count split across 2 cores): the
        # DMA still happens but all compute / masking is skipped.
        @pl.when(tile_idx < n_tiles)
        def _():
            accumulate()
    else:
        accumulate()

    @pl.when(i == npc - 1)
    def _():
        out_ref[...] = acc_ref[...]     # lane-dense (8,128) partial per core


def bce_focal_loss(predict, target, gamma=GAMMA, alpha=ALPHA, reduction="mean",
                   tile_rows=8192, num_cores=None, approx_recip=True):
    if predict.shape != target.shape:
        raise ValueError("predict and target must have the same shape")
    n_elems = predict.size
    if num_cores is None:
        num_cores = _tensorcores_per_chip()

    p_flat = predict.reshape(-1)
    t_flat = target.reshape(-1)
    rem = n_elems % LANES
    rows = n_elems // LANES

    # <128-element ragged tail: negligible work, plain JAX.
    if rem:
        tail_sum = jnp.sum(_focal_elementwise(
            p_flat[rows * LANES:].astype(jnp.float32),
            t_flat[rows * LANES:].astype(jnp.float32), gamma, alpha))
    else:
        tail_sum = jnp.float32(0.0)

    if rows == 0:
        total = tail_sum
    else:
        if rem:
            # TODO(synk): for ragged sizes this prefix slice may copy; a 1-D
            # blocked kernel could avoid it, but NCHW losses are rarely ragged.
            p2 = p_flat[: rows * LANES].reshape(rows, LANES)
            t2 = t_flat[: rows * LANES].reshape(rows, LANES)
        else:
            p2 = p_flat.reshape(rows, LANES)      # free lane-dense view
            t2 = t_flat.reshape(rows, LANES)

        # Tile rows: as big as requested, multiple of the dtype min-sublane
        # count, never uselessly larger than the (rounded-up) row count.
        min_sub = max(_min_sublanes(p2.dtype), _min_sublanes(t2.dtype))
        tr = max(min_sub, min(int(tile_rows), _round_up(rows, min_sub)))
        tr = (tr // min_sub) * min_sub

        n_tiles = -(-rows // tr)
        cores = max(1, min(int(num_cores), n_tiles))
        npc = -(-n_tiles // cores)
        mask_rows = (rows % tr) != 0              # only the edge block is partial
        skip_duplicate = cores * npc > n_tiles    # odd split across 2 cores

        in_spec = pl.BlockSpec(
            (tr, LANES),
            lambda c, i: (jnp.minimum(c * npc + i, n_tiles - 1), 0))

        # 2 streams x 2 pipeline buffers + slack; explicitly above v5e's 16 MiB
        # default scoped VMEM, capped for v7x's 64 MiB physical VMEM per TC.
        bytes_per_row = LANES * (jnp.dtype(p2.dtype).itemsize
                                 + jnp.dtype(t2.dtype).itemsize)
        vmem_limit = int(min(max(2 * tr * bytes_per_row + (4 << 20), 32 << 20),
                             64 << 20))

        kernel = functools.partial(
            _focal_sum_kernel, gamma=gamma, alpha=alpha, rows=rows,
            tile_rows=tr, npc=npc, n_tiles=n_tiles, mask_rows=mask_rows,
            skip_duplicate=skip_duplicate, approx_recip=approx_recip)

        partials = pl.pallas_call(
            kernel,
            out_shape=jax.ShapeDtypeStruct((cores * SUBLANES, LANES),
                                           jnp.float32),
            grid_spec=pltpu.PrefetchScalarGridSpec(
                num_scalar_prefetch=0,
                grid=(cores, npc),
                in_specs=[in_spec, in_spec],
                out_specs=pl.BlockSpec((SUBLANES, LANES), lambda c, i: (c, 0)),
                scratch_shapes=[pltpu.VMEM((SUBLANES, LANES), jnp.float32)],
            ),
            compiler_params=pltpu.CompilerParams(
                dimension_semantics=("parallel", "arbitrary"),
                vmem_limit_bytes=vmem_limit),
        )(p2, t2)

        total = jnp.sum(partials) + tail_sum

    if reduction == "mean":
        return total / jnp.float32(n_elems)
    elif reduction == "sum":
        return total
    else:
        # TODO(synk): reduction='none' would need an elementwise-output kernel.
        raise NotImplementedError("only 'mean' and 'sum' reductions supported")


def _reference(predict, target, gamma=GAMMA, alpha=ALPHA):
    pt = jax.nn.sigmoid(predict)
    loss = (-alpha * (1 - pt) ** gamma * target * jnp.log(pt)
            - (1 - alpha) * pt ** gamma * (1 - target) * jnp.log(1 - pt))
    return jnp.mean(loss)


if __name__ == "__main__":
    key = jax.random.PRNGKey(0)
    k1, k2 = jax.random.split(key)
    # logits (predict) and binary targets, NCHW like the PyTorch module expects
    predict = jax.random.normal(k1, (2, 4, 16, 16), dtype=jnp.float32)
    target = (jax.random.uniform(k2, (2, 4, 16, 16)) > 0.5).astype(jnp.float32)
    ref = _reference(predict, target)

    # 1) exact-math path (no approx reciprocal): tight correctness check.
    out_exact = jax.block_until_ready(
        bce_focal_loss(predict, target, approx_recip=False))
    assert jnp.allclose(out_exact, ref, rtol=1e-5, atol=1e-6), (out_exact, ref)

    # 2) default fast path (approx EUP reciprocal): looser smoke tolerance.
    out_fast = jax.block_until_ready(bce_focal_loss(predict, target))
    assert jnp.allclose(out_fast, ref, rtol=2e-2, atol=1e-5), (out_fast, ref)

    # 3) ragged shape: exercises the partial edge block, row mask and jnp tail.
    k3, k4 = jax.random.split(k2)
    p_rag = jax.random.normal(k3, (3, 5, 7, 11), dtype=jnp.float32)
    t_rag = (jax.random.uniform(k4, (3, 5, 7, 11)) > 0.5).astype(jnp.float32)
    out_rag = jax.block_until_ready(
        bce_focal_loss(p_rag, t_rag, approx_recip=False))
    ref_rag = _reference(p_rag, t_rag)
    assert jnp.allclose(out_rag, ref_rag, rtol=1e-5, atol=1e-6), (out_rag, ref_rag)

    # 4) bf16 inputs (halved HBM traffic); compared vs reference on the same
    #    bf16-rounded values so only kernel math differs.
    p_bf = predict.astype(jnp.bfloat16)
    t_bf = target.astype(jnp.bfloat16)
    out_bf = jax.block_until_ready(
        bce_focal_loss(p_bf, t_bf, approx_recip=False))
    ref_bf = _reference(p_bf.astype(jnp.float32), t_bf.astype(jnp.float32))
    assert jnp.allclose(out_bf, ref_bf, rtol=1e-5, atol=1e-6), (out_bf, ref_bf)

    print("KERNEL_OK")
</pallas_src>

<mosaic_0001>
module attributes {stable_mosaic.version = 11 : i64} {
  func.func @_focal_sum_kernel(%arg0: i32, %arg1: i32, %arg2: memref<16x128xf32, #tpu.memory_space<vmem>>, %arg3: memref<16x128xf32, #tpu.memory_space<vmem>>, %arg4: memref<8x128xf32, #tpu.memory_space<vmem>>, %arg5: memref<8x128xf32, #tpu.memory_space<vmem>>) attributes {dimension_semantics = [#tpu.dimension_semantics<parallel>, #tpu.dimension_semantics<arbitrary>], iteration_bounds = array<i64: 1, 1>, scalar_prefetch = 0 : i64, scratch_operands = 1 : i64, tpu.core_type = #tpu.core_type<tc>, window_params = [{transform_indices = @transform_0, window_bounds = array<i64: 16, 128>}, {transform_indices = @transform_1, window_bounds = array<i64: 16, 128>}, {transform_indices = @transform_2, window_bounds = array<i64: 8, 128>}]} {
    %c0_i32 = arith.constant 0 : i32
    %0 = arith.cmpi eq, %arg1, %c0_i32 : i32
    %1 = arith.extui %0 : i1 to i32
    %c0_i32_0 = arith.constant 0 : i32
    %2 = arith.cmpi ne, %1, %c0_i32_0 : i32
    scf.if %2 {
      %cst_22 = arith.constant 0.000000e+00 : f32
      %51 = vector.broadcast %cst_22 : f32 to vector<8x128xf32>
      %c0_23 = arith.constant 0 : index
      %c0_24 = arith.constant 0 : index
      %52 = vector.load %arg5[%c0_23, %c0_24] : memref<8x128xf32, #tpu.memory_space<vmem>>, vector<8x128xf32>
      tpu.vector_store %arg5[%c0_23, %c0_24], %51 {strides = array<i32>} : memref<8x128xf32, #tpu.memory_space<vmem>>, vector<8x128xf32>,
    } else {
    }
    %c0 = arith.constant 0 : index
    %c0_1 = arith.constant 0 : index
    %3 = vector.load %arg2[%c0, %c0_1] : memref<16x128xf32, #tpu.memory_space<vmem>>, vector<16x128xf32>
    %c0_2 = arith.constant 0 : index
    %c0_3 = arith.constant 0 : index
    %4 = vector.load %arg3[%c0_2, %c0_3] : memref<16x128xf32, #tpu.memory_space<vmem>>, vector<16x128xf32>
    %5 = math.absf %3 : vector<16x128xf32>
    %cst = arith.constant 0.000000e+00 : f32
    %6 = vector.broadcast %cst : f32 to vector<16x128xf32>
    %7 = arith.subf %6, %5 : vector<16x128xf32>
    %8 = math.exp %7 : vector<16x128xf32>
    %cst_4 = arith.constant 1.000000e+00 : f32
    %9 = vector.broadcast %cst_4 : f32 to vector<16x128xf32>
    %10 = arith.addf %9, %8 : vector<16x128xf32>
    %11 = math.log %10 : vector<16x128xf32>
    %cst_5 = arith.constant 0.000000e+00 : f32
    %12 = vector.broadcast %cst_5 : f32 to vector<16x128xf32>
    %13 = arith.minimumf %3, %12 : vector<16x128xf32>
    %14 = arith.subf %13, %11 : vector<16x128xf32>
    %cst_6 = arith.constant 0.000000e+00 : f32
    %15 = vector.broadcast %cst_6 : f32 to vector<16x128xf32>
    %16 = arith.subf %15, %3 : vector<16x128xf32>
    %cst_7 = arith.constant 0.000000e+00 : f32
    %17 = vector.broadcast %cst_7 : f32 to vector<16x128xf32>
    %18 = arith.minimumf %16, %17 : vector<16x128xf32>
    %19 = arith.subf %18, %11 : vector<16x128xf32>
    %cst_8 = arith.constant 1.000000e+00 : f32
    %20 = vector.broadcast %cst_8 : f32 to vector<16x128xf32>
    %21 = arith.addf %20, %8 : vector<16x128xf32>
    %cst_9 = arith.constant 1.000000e+00 : f32
    %22 = vector.broadcast %cst_9 : f32 to vector<16x128xf32>
    %23 = arith.divf %22, %21 : vector<16x128xf32>
    %cst_10 = arith.constant 0.000000e+00 : f32
    %24 = vector.broadcast %cst_10 : f32 to vector<16x128xf32>
    %25 = arith.cmpf oge, %3, %24 : vector<16x128xf32>
    %26 = arith.mulf %8, %23 : vector<16x128xf32>
    %27 = arith.select %25, %23, %26 : vector<16x128xi1>, vector<16x128xf32>
    %cst_11 = arith.constant 1.000000e+00 : f32
    %28 = vector.broadcast %cst_11 : f32 to vector<16x128xf32>
    %29 = arith.subf %28, %27 : vector<16x128xf32>
    %30 = arith.mulf %29, %29 : vector<16x128xf32>
    %31 = arith.mulf %27, %27 : vector<16x128xf32>
    %cst_12 = arith.constant -2.500000e-01 : f32
    %32 = vector.broadcast %cst_12 : f32 to vector<16x128xf32>
    %33 = arith.mulf %32, %30 : vector<16x128xf32>
    %34 = arith.mulf %33, %4 : vector<16x128xf32>
    %35 = arith.mulf %34, %14 : vector<16x128xf32>
    %cst_13 = arith.constant 7.500000e-01 : f32
    %36 = vector.broadcast %cst_13 : f32 to vector<16x128xf32>
    %37 = arith.mulf %36, %31 : vector<16x128xf32>
    %cst_14 = arith.constant 1.000000e+00 : f32
    %38 = vector.broadcast %cst_14 : f32 to vector<16x128xf32>
    %39 = arith.subf %38, %4 : vector<16x128xf32>
    %40 = arith.mulf %37, %39 : vector<16x128xf32>
    %41 = arith.mulf %40, %19 : vector<16x128xf32>
    %42 = arith.subf %35, %41 : vector<16x128xf32>
    %c0_15 = arith.constant 0 : index
    %c0_16 = arith.constant 0 : index
    %43 = vector.load %arg5[%c0_15, %c0_16] : memref<8x128xf32, #tpu.memory_space<vmem>>, vector<1x128xf32>
    %cst_17 = arith.constant dense<0.000000e+00> : vector<128xf32>
    %44 = vector.multi_reduction <add>, %42, %cst_17 [0] : vector<16x128xf32> to vector<128xf32>
    %45 = vector.shape_cast %44 : vector<128xf32> to vector<1x128xf32>
    %46 = arith.addf %43, %45 : vector<1x128xf32>
    %c0_18 = arith.constant 0 : index
    %c0_19 = arith.constant 0 : index
    %47 = vector.load %arg5[%c0_18, %c0_19] : memref<8x128xf32, #tpu.memory_space<vmem>>, vector<1x128xf32>
    tpu.vector_store %arg5[%c0_18, %c0_19], %46 {strides = array<i32>} : memref<8x128xf32, #tpu.memory_space<vmem>>, vector<1x128xf32>,
    %c0_i32_20 = arith.constant 0 : i32
    %48 = arith.cmpi eq, %arg1, %c0_i32_20 : i32
    %49 = arith.extui %48 : i1 to i32
    %c0_i32_21 = arith.constant 0 : i32
    %50 = arith.cmpi ne, %49, %c0_i32_21 : i32
    scf.if %50 {
      %c0_22 = arith.constant 0 : index
      %c0_23 = arith.constant 0 : index
      %51 = vector.load %arg5[%c0_22, %c0_23] : memref<8x128xf32, #tpu.memory_space<vmem>>, vector<8x128xf32>
      %c0_24 = arith.constant 0 : index
      %c0_25 = arith.constant 0 : index
      %52 = vector.load %arg4[%c0_24, %c0_25] : memref<8x128xf32, #tpu.memory_space<vmem>>, vector<8x128xf32>
      tpu.vector_store %arg4[%c0_24, %c0_25], %51 {strides = array<i32>} : memref<8x128xf32, #tpu.memory_space<vmem>>, vector<8x128xf32>,
    } else {
    }
    return
  }
  func.func @transform_0(%arg0: i32, %arg1: i32) -> (i32, i32) {
    %c1_i32 = arith.constant 1 : i32
    %0 = arith.muli %arg0, %c1_i32 : i32
    %1 = arith.addi %0, %arg1 : i32
    %c0_i32 = arith.constant 0 : i32
    %2 = arith.minsi %1, %c0_i32 : i32
    %c0_i32_0 = arith.constant 0 : i32
    %c0_i32_1 = arith.constant 0 : i32
    return %2, %c0_i32_0 : i32, i32
  }
  func.func @transform_1(%arg0: i32, %arg1: i32) -> (i32, i32) {
    %c1_i32 = arith.constant 1 : i32
    %0 = arith.muli %arg0, %c1_i32 : i32
    %1 = arith.addi %0, %arg1 : i32
    %c0_i32 = arith.constant 0 : i32
    %2 = arith.minsi %1, %c0_i32 : i32
    %c0_i32_0 = arith.constant 0 : i32
    %c0_i32_1 = arith.constant 0 : i32
    return %2, %c0_i32_0 : i32, i32
  }
  func.func @transform_2(%arg0: i32, %arg1: i32) -> (i32, i32) {
    %c0_i32 = arith.constant 0 : i32
    %c0_i32_0 = arith.constant 0 : i32
    return %arg0, %c0_i32 : i32, i32
  }
}

</mosaic_0001>

<bundles_post_ra>
// kernel: tpu_custom_call.1
= control target key start
LH: loop header
LB: loop body
LE: loop exit
PB: predicated region body
PF: predicated region fallthrough
CT: control target
= control target key end

     0   :  { %7 = vsyncpa [#allocation4], 0  ;;  %s330_s0 = inlined_call_operand.hbm [shape: f32[16,128], index: 0, kind: input, shape index: {}]   ;;  %s331_s1 = inlined_call_operand.hbm [shape: f32[16,128], index: 1, kind: input, shape index: {}]   ;;  %s332_s2 = inlined_call_operand.hbm [shape: f32[8,128], index: 2, kind: output, shape index: {}]  }
   0x1   :  { %8 = vsyncpa [#allocation7], 0 }
   0x2   :  { %9 = vsyncpa [#allocation5], 0  ;;  %s20_s11 = sshll.u32 %s330_s0, 4  ;;  %s288_s12 = smov [#allocation3]   ;;  %s21_s11 = int_to_ptr.hbm [resolvable:$true] %s20_s11 }
   0x3   :  { %s22_s13 = sshll.u32 %s288_s12, 4  ;;  %s39_s16 = sshll.u32 %s331_s1, 4  ;;  %s23_s13 = int_to_ptr.vmem [resolvable:$true] %s22_s13  ;;  %s40_s16 = int_to_ptr.hbm [resolvable:$true] %s39_s16 }
   0x4   :  { %s289_s17 = smov 128   ;;  %s290_s18 = smov 8  }
   0x5   :  { %28 = dma.hbm_to_vmem [thread:$0]  %s21_s11, 256, %s23_s13, [#allocation4], %s289_s17, %s289_s17, %s290_s18  }
   0x6   :  { %s291_s19 = smov [#allocation6]  }
   0x7   :  { %s41_s20 = sshll.u32 %s291_s19, 4  ;;  %s42_s20 = int_to_ptr.vmem [resolvable:$true] %s41_s20 }
   0x8   :  { %47 = dma.hbm_to_vmem [thread:$0]  %s40_s16, 256, %s42_s20, [#allocation7], %s289_s17, %s289_s17, %s290_s18  }
   0x9   :  { %282 = dma.done.wait [#allocation4], 256  }
   0xa   :  { %283 = vsyncadd [#allocation4], 4294967040 }
   0xb   :  { %284 = dma.done.wait [#allocation7], 256  }
   0xc   :  { %285 = vsyncadd [#allocation7], 4294967040  ;;  %v292_v0 = vmov 0.0   ;;  %v315_v1 = vld [vmem:[#allocation3] sm:$0xff]  ;;  %v317_v2 = vld [vmem:[#allocation3 + $0x8] sm:$0xff]  ;;  %s293_s0 = smov [#allocation8]  }
   0xd   :  { %68 = vst [vmem:[#allocation2] sm:$0xff] %v292_v0  ;;  %v73_v3 = vand.u32 2147483647, %v315_v1  ;;  %v74_v4 = vand.u32 2147483647, %v317_v2  ;;  %v91_v29 = vsub.f32 0.0, %v315_v1 }
   0xe   :  { %v92_v32 = vsub.f32 0.0, %v317_v2  ;;  %vm127_vm8 = vcmp.ge.f32.partialorder %v315_v1, 0.0  ;;  %v71_v36 = vld [vmem:[#allocation6] sm:$0xff]  ;;  %vm128_vm9 = vcmp.ge.f32.partialorder %v317_v2, 0.0  ;;  %v72_v39 = vld [vmem:[#allocation6 + $0x8] sm:$0xff]  ;;  %v87_v44 = vmin.f32 %v315_v1, 0.0 }
   0xf   :  { %v75_v5 = vsub.f32 0.0, %v73_v3  ;;  %v76_v6 = vsub.f32 0.0, %v74_v4  ;;  %v93_v41 = vmin.f32 %v91_v29, 0.0  ;;  %v147_v50 = vsub.f32 1.0, %v71_v36  ;;  %s175_s1 = sshll.u32 %s293_s0, 4  ;;  %s177_s23 = sshll.u32 %s332_s2, 4  ;;  %s176_s1 = int_to_ptr.vmem [resolvable:$true] %s175_s1  ;;  %s178_s23 = int_to_ptr.hbm [resolvable:$true] %s177_s23 }
  0x10   :  { %v94_v45 = vmin.f32 %v92_v32, 0.0  ;;  %v88_v51 = vmin.f32 %v317_v2, 0.0  ;;  %v148_v54 = vsub.f32 1.0, %v72_v39 }
  0x11   :  { %v77_v7 = vmul.f32 1.442695, %v75_v5  ;;  %v79_v8 = vmul.f32 1.442695, %v76_v6 }
  0x13   :  { %198 = vpow2.f32 %v77_v7 }
  0x14   :  { %200 = vpow2.f32 %v79_v8 }
  0x19   :  { %v199_v9 = vpop.eup %198 }
  0x1a   :  { %v201_v10 = vpop.eup %200  ;;  %v81_v11 = vadd.f32 1.0, %v199_v9 }
  0x1b   :  { %v82_v12 = vadd.f32 1.0, %v201_v10 }
  0x1c   :  { %202 = vrcp.f32 %v81_v11  ;;  %vm102_vm0 = vweird.f32 %v81_v11  ;;  %v106_v16 = vand.u32 2147483647, %v81_v11  ;;  %v108_v17 = vand.u32 2147483648, %v81_v11 }
  0x1d   :  { %204 = vrcp.f32 %v82_v12  ;;  %v123_v20 = vand.u32 2147483648, %v82_v12  ;;  %vm117_vm2 = vweird.f32 %v82_v12  ;;  %v121_v22 = vand.u32 2147483647, %v82_v12 }
  0x1e   :  { %206 = vlog2.f32 %v81_v11  ;;  %v109_v24 = vor.u32 1.1754944e-38, %v108_v17  ;;  %vm107_vm5 = vcmp.eq.f32.partialorder %v106_v16, 8.507059e+37  ;;  %v155_v17 = vld [vmem:[#allocation2] sm:$0x1] }
  0x1f   :  { %208 = vlog2.f32 %v82_v12  ;;  %v124_v28 = vor.u32 1.1754944e-38, %v123_v20  ;;  %vm122_vm7 = vcmp.eq.f32.partialorder %v121_v22, 8.507059e+37 }
  0x22   :  { %v203_v13 = vpop.eup %202 }
  0x23   :  { %v205_v14 = vpop.eup %204  ;;  %v98_v15 = vmul.f32 %v203_v13, %v81_v11  ;;  %vm103_vm1 = vweird.f32 %v203_v13 }
  0x24   :  { %v113_v18 = vmul.f32 %v205_v14, %v82_v12  ;;  %vm118_vm3 = vweird.f32 %v205_v14  ;;  %vm104_vm4 = vmor %vm102_vm0, %vm103_vm1  ;;  %v207_v26 = vpop.eup %206 }
  0x25   :  { %v99_v19 = vsub.f32 1.0, %v98_v15  ;;  %vm119_vm6 = vmor %vm117_vm2, %vm118_vm3  ;;  %v209_v31 = vpop.eup %208  ;;  %v84_v40 = vmul.f32 0.6931472, %v207_v26 }
  0x26   :  { %v114_v21 = vsub.f32 1.0, %v113_v18  ;;  %v86_v43 = vmul.f32 0.6931472, %v209_v31 }
  0x27   :  { %v100_v23 = vmul.f32 %v203_v13, %v99_v19  ;;  %v95_v55 = vsub.f32 %v93_v41, %v84_v40  ;;  %v89_v61 = vsub.f32 %v87_v44, %v84_v40 }
  0x28   :  { %v115_v25 = vmul.f32 %v205_v14, %v114_v21  ;;  %v96_v58 = vsub.f32 %v94_v45, %v86_v43  ;;  %v90_v0 = vsub.f32 %v88_v51, %v86_v43 }
  0x29   :  { %v101_v27 = vadd.f32 %v203_v13, %v100_v23 }
  0x2a   :  { %v116_v30 = vadd.f32 %v205_v14, %v115_v25 }
  0x2b   :  { %v105_v33 = vsel %vm104_vm4, %v203_v13, %v101_v27 }
  0x2c   :  { %v110_v34 = vsel %vm107_vm5, %v109_v24, %v105_v33  ;;  %v120_v35 = vsel %vm119_vm6, %v205_v14, %v116_v30 }
  0x2d   :  { %v125_v37 = vsel %vm122_vm7, %v124_v28, %v120_v35  ;;  %v129_v38 = vmul.f32 %v199_v9, %v110_v34 }
  0x2e   :  { %v130_v42 = vmul.f32 %v201_v10, %v125_v37 }
  0x2f   :  { %v131_v46 = vsel %vm127_vm8, %v110_v34, %v129_v38 }
  0x30   :  { %v132_v47 = vsel %vm128_vm9, %v125_v37, %v130_v42  ;;  %v133_v48 = vsub.f32 1.0, %v131_v46  ;;  %v137_v49 = vmul.f32 %v131_v46, %v131_v46 }
  0x31   :  { %v134_v52 = vsub.f32 1.0, %v132_v47  ;;  %v138_v53 = vmul.f32 %v132_v47, %v132_v47 }
  0x32   :  { %v135_v56 = vmul.f32 %v133_v48, %v133_v48  ;;  %v145_v57 = vmul.f32 0.75, %v137_v49 }
  0x33   :  { %v136_v59 = vmul.f32 %v134_v52, %v134_v52  ;;  %v146_v60 = vmul.f32 0.75, %v138_v53 }
  0x34   :  { %v139_v62 = vmul.f32 -0.25, %v135_v56  ;;  %v149_v63 = vmul.f32 %v147_v50, %v145_v57 }
  0x35   :  { %v140_v1 = vmul.f32 -0.25, %v136_v59  ;;  %v150_v3 = vmul.f32 %v148_v54, %v146_v60 }
  0x36   :  { %v141_v4 = vmul.f32 %v139_v62, %v71_v36  ;;  %v151_v5 = vmul.f32 %v149_v63, %v95_v55 }
  0x37   :  { %v142_v6 = vmul.f32 %v140_v1, %v72_v39  ;;  %v152_v7 = vmul.f32 %v150_v3, %v96_v58 }
  0x38   :  { %v143_v2 = vmul.f32 %v141_v4, %v89_v61 }
  0x39   :  { %v144_v8 = vmul.f32 %v142_v6, %v90_v0 }
  0x3a   :  { %v153_v9 = vsub.f32 %v143_v2, %v151_v5 }
  0x3b   :  { %v154_v10 = vsub.f32 %v144_v8, %v152_v7 }
  0x3d   :  { %v156_v11 = vadd.f32 %v154_v10, %v153_v9 }
  0x3f   :  { %v157_v12 = vrot.slane %v156_v11, 4 }
  0x41   :  { %v158_v13 = vadd.f32 %v157_v12, %v156_v11 }
  0x43   :  { %v159_v14 = vrot.slane %v158_v13, 2 }
  0x45   :  { %v160_v15 = vadd.f32 %v159_v14, %v158_v13 }
  0x47   :  { %v161_v16 = vrot.slane %v160_v15, 1 }
  0x49   :  { %v162_v18 = vadd.f32 %v161_v16, %v160_v15 }
  0x4b   :  { %v163_v19 = vadd.f32 %v162_v18, %v155_v17 }
  0x4d   :  { %164 = vst [vmem:[#allocation2] sm:$0x1] %v163_v19 }
  0x54   :  { %v168_v20 = vld [vmem:[#allocation2] sm:$0xff] }
  0x55   :  { %169 = vst [vmem:[#allocation8] sm:$0xff] %v168_v20 }
  0x56   :  { %180 = dma.vmem_to_hbm [thread:$0]  %s176_s1, 128, %s178_s23, [#allocation5]  }
  0x57   :  { %286 = dma.done.wait [#allocation5], 128  }
  0x58   :  { %287 = vsyncadd [#allocation5], 4294967168 }
  0x59   :  { %185 = vsyncpa [#allocation4], 1 }
  0x5a   :  { %186 = vsyncpa [#allocation7], 1 }
  0x5b   :  { %187 = vsyncpa [#allocation5], 1 }

</bundles_post_ra>
